<compile_context>
chip_gen: v5e
topology: v5e:2x2
jax: 0.10.0
libtpu: 0.0.40
codegen_flags: <defaults>
</compile_context>

<pallas_src>
import jax
import jax.numpy as jnp
from jax.experimental import pallas as pl
from jax.experimental.pallas import tpu as pltpu


def mlp_kernel(x_ref, w1_ref, b1_ref, w2_ref, b2_ref, o_ref):
    # x:  (B, K) f32   w1: (K, H) bf16   b1: (1, H) f32
    # w2: (H, N) bf16  b2: (1, N) f32    o:  (B, N) f32
    h = jnp.dot(x_ref[...].astype(jnp.bfloat16), w1_ref[...],
                preferred_element_type=jnp.float32) + b1_ref[...]
    h = jnp.maximum(h, 0.0)  # ReLU in f32 on the VPU
    y = jnp.dot(h.astype(jnp.bfloat16), w2_ref[...],
                preferred_element_type=jnp.float32) + b2_ref[...]
    o_ref[...] = y.astype(o_ref.dtype)


@jax.jit
def neural_network_forward(x, w1, b1, w2, b2):
    B, d_in = x.shape
    H = w1.shape[1]
    d_out = w2.shape[1]

    flops = 2 * B * (d_in * H + H * d_out)
    bytes_accessed = (4 * (x.size + b1.size + b2.size + B * d_out)   # f32 operands
                      + 2 * (w1.size + w2.size))                     # bf16 weights

    vmem = pl.BlockSpec(memory_space=pltpu.MemorySpace.VMEM)
    return pl.pallas_call(
        mlp_kernel,
        out_shape=jax.ShapeDtypeStruct((B, d_out), jnp.float32),
        in_specs=[vmem] * 5,
        out_specs=vmem,
        cost_estimate=pl.CostEstimate(
            flops=flops, transcendentals=0, bytes_accessed=bytes_accessed),
    )(x, w1, b1, w2, b2)


def init_params(key, d_in, hidden, d_out):
    # Deterministic init mimicking PyTorch Linear default:
    # U(-1/sqrt(fan_in), 1/sqrt(fan_in)) for both weights and biases.
    k1, k2, k3, k4 = jax.random.split(key, 4)
    lim1 = 1.0 / jnp.sqrt(d_in)
    lim2 = 1.0 / jnp.sqrt(hidden)
    # Stored pre-transposed: (fan_in, fan_out) so the kernel computes x @ W.
    w1 = jax.random.uniform(k1, (d_in, hidden), jnp.float32, -lim1, lim1)
    b1 = jax.random.uniform(k2, (1, hidden), jnp.float32, -lim1, lim1)
    w2 = jax.random.uniform(k3, (hidden, d_out), jnp.float32, -lim2, lim2)
    b2 = jax.random.uniform(k4, (1, d_out), jnp.float32, -lim2, lim2)
    return w1, b1, w2, b2


def prepare_params(w1, b1, w2, b2):
    # One-time prep, hoisted out of the forward path: bf16 weights for native
    # MXU matmuls on all generations; biases stay f32.
    return w1.astype(jnp.bfloat16), b1, w2.astype(jnp.bfloat16), b2


if __name__ == "__main__":
    nodes = [32, 16]   # nodes[0] = input dim, nodes[1] = output dim
    hidden = 256       # fixed by the module spec
    batch = 8

    key = jax.random.PRNGKey(0)
    kx, kp = jax.random.split(key)
    x = jax.random.normal(kx, (batch, nodes[0]), jnp.float32)
    w1_f32, b1, w2_f32, b2 = init_params(kp, nodes[0], hidden, nodes[1])
    w1, b1, w2, b2 = prepare_params(w1_f32, b1, w2_f32, b2)

    out = neural_network_forward(x, w1, b1, w2, b2)
    out = jax.block_until_ready(out)
    assert out.shape == (batch, nodes[1])

    # Reference 1: identical bf16-weight math in plain JAX (tight tolerance).
    h_ref = jnp.maximum(
        jnp.dot(x.astype(jnp.bfloat16), w1, preferred_element_type=jnp.float32) + b1,
        0.0)
    ref = jnp.dot(h_ref.astype(jnp.bfloat16), w2,
                  preferred_element_type=jnp.float32) + b2
    assert jnp.allclose(out, ref, atol=1e-3, rtol=1e-3)

    # Reference 2: original full-f32 PyTorch-equivalent forward (loose tolerance
    # to cover the bf16 weight rounding).
    ref_f32 = jnp.maximum(x @ w1_f32 + b1, 0.0) @ w2_f32 + b2
    assert jnp.allclose(out, ref_f32, atol=5e-2, rtol=5e-2)

    print("KERNEL_OK")
</pallas_src>

<mosaic_0001>
module attributes {stable_mosaic.version = 11 : i64} {
  func.func @mlp_kernel(%arg0: memref<8x32xf32, #tpu.memory_space<vmem>>, %arg1: memref<32x256xbf16, #tpu.memory_space<vmem>>, %arg2: memref<1x256xf32, #tpu.memory_space<vmem>>, %arg3: memref<256x16xbf16, #tpu.memory_space<vmem>>, %arg4: memref<1x16xf32, #tpu.memory_space<vmem>>, %arg5: memref<8x16xf32, #tpu.memory_space<vmem>>) attributes {dimension_semantics = [], scalar_prefetch = 0 : i64, scratch_operands = 0 : i64, tpu.core_type = #tpu.core_type<tc>} {
    %c0 = arith.constant 0 : index
    %c0_0 = arith.constant 0 : index
    %0 = vector.load %arg0[%c0, %c0_0] : memref<8x32xf32, #tpu.memory_space<vmem>>, vector<8x32xf32>
    %1 = arith.truncf %0 : vector<8x32xf32> to vector<8x32xbf16>
    %c0_1 = arith.constant 0 : index
    %c0_2 = arith.constant 0 : index
    %2 = vector.load %arg1[%c0_1, %c0_2] : memref<32x256xbf16, #tpu.memory_space<vmem>>, vector<32x256xbf16>
    %cst = arith.constant dense<0.000000e+00> : vector<8x256xf32>
    %3 = tpu.matmul %1, %2, %cst {dimension_numbers = #tpu.dot_dimension_numbers<[1], [0], [0], [1], [0, 0, 1, 1], [], []>} : vector<8x32xbf16>, vector<32x256xbf16>, vector<8x256xf32> -> vector<8x256xf32>
    %c0_3 = arith.constant 0 : index
    %c0_4 = arith.constant 0 : index
    %4 = vector.load %arg2[%c0_3, %c0_4] : memref<1x256xf32, #tpu.memory_space<vmem>>, vector<1x256xf32>
    %5 = vector.broadcast %4 : vector<1x256xf32> to vector<8x256xf32>
    %6 = arith.addf %3, %5 : vector<8x256xf32>
    %cst_5 = arith.constant 0.000000e+00 : f32
    %7 = vector.broadcast %cst_5 : f32 to vector<8x256xf32>
    %8 = arith.maximumf %6, %7 : vector<8x256xf32>
    %9 = arith.truncf %8 : vector<8x256xf32> to vector<8x256xbf16>
    %c0_6 = arith.constant 0 : index
    %c0_7 = arith.constant 0 : index
    %10 = vector.load %arg3[%c0_6, %c0_7] : memref<256x16xbf16, #tpu.memory_space<vmem>>, vector<256x16xbf16>
    %cst_8 = arith.constant dense<0.000000e+00> : vector<8x16xf32>
    %11 = tpu.matmul %9, %10, %cst_8 {dimension_numbers = #tpu.dot_dimension_numbers<[1], [0], [0], [1], [0, 0, 1, 1], [], []>} : vector<8x256xbf16>, vector<256x16xbf16>, vector<8x16xf32> -> vector<8x16xf32>
    %c0_9 = arith.constant 0 : index
    %c0_10 = arith.constant 0 : index
    %12 = vector.load %arg4[%c0_9, %c0_10] : memref<1x16xf32, #tpu.memory_space<vmem>>, vector<1x16xf32>
    %13 = vector.broadcast %12 : vector<1x16xf32> to vector<8x16xf32>
    %14 = arith.addf %11, %13 : vector<8x16xf32>
    %c0_11 = arith.constant 0 : index
    %c0_12 = arith.constant 0 : index
    %15 = vector.load %arg5[%c0_11, %c0_12] : memref<8x16xf32, #tpu.memory_space<vmem>>, vector<8x16xf32>
    tpu.vector_store %arg5[%c0_11, %c0_12], %14 {strides = array<i32>} : memref<8x16xf32, #tpu.memory_space<vmem>>, vector<8x16xf32>,
    return
  }
}

</mosaic_0001>

<bundles_post_ra>
// kernel: neural_network_forward.1
= control target key start
LH: loop header
LB: loop body
LE: loop exit
PB: predicated region body
PF: predicated region fallthrough
CT: control target
= control target key end

     0   :  { %vm54_vm0 = vcmask 261120   ;;  %s509_s0 = inlined_call_operand.vmem [shape: f32[8,32], index: 0, kind: input, shape index: {}]   ;;  %s510_s1 = inlined_call_operand.vmem [shape: bf16[32,256], index: 1, kind: input, shape index: {}]   ;;  %s511_s2 = inlined_call_operand.vmem [shape: f32[1,256], index: 2, kind: input, shape index: {}]   ;;  %s512_s3 = inlined_call_operand.vmem [shape: bf16[256,16], index: 3, kind: input, shape index: {}]   ;;  %s513_s4 = inlined_call_operand.vmem [shape: f32[1,16], index: 4, kind: input, shape index: {}]   ;;  %s514_s5 = inlined_call_operand.hbm [shape: f32[8,16], index: 5, kind: output, shape index: {}]  }
   0x1   :  { %v274_v0 = vld [vmem:[%s510_s1 + $0x10] sm:$0xf]  ;;  %v349_v1 = vld [vmem:[%s510_s1 + $0x14] sm:$0xf0]  ;;  %v348_v2 = vld [vmem:[%s510_s1 + $0x14] sm:$0xf] }
   0x2   :  { %v275_v3 = vor.u32 %v349_v1, %v274_v0  ;;  %v276_v4 = vld [vmem:[%s510_s1 + $0x18] sm:$0xf0]  ;;  %v266_v5 = vld [vmem:[%s510_s1] sm:$0xf]  ;;  %v347_v6 = vld [vmem:[%s510_s1 + $0x4] sm:$0xf0] }
   0x3   :  { %v279_v7 = vor.u32 %v348_v2, %v276_v4  ;;  %v346_v8 = vld [vmem:[%s510_s1 + $0x4] sm:$0xf]  ;;  %v268_v9 = vld [vmem:[%s510_s1 + $0x8] sm:$0xf0]  ;;  %v267_v10 = vor.u32 %v347_v6, %v266_v5  ;;  %v357_v12 = vld [vmem:[%s512_s3 + $0x38] sm:$0xff] }
   0x4   :  { %64 = vmatpush.bf16.msra.mxu0 %v275_v3  ;;  %v22_v11 = vld [vmem:[%s509_s0] sm:$0xff]  ;;  %v365_v13 = vld [vmem:[%s512_s3 + $0x78] sm:$0xff]  ;;  %v271_v14 = vor.u32 %v346_v8, %v268_v9  ;;  %220 = vmatpush.bf16.msra.mxu2 %v357_v12  ;;  %v356_v15 = vld [vmem:[%s512_s3 + $0x30] sm:$0xff] }
   0x5   :  { %77 = vmatpush.bf16.msra.mxu1 %v279_v7  ;;  %233 = vmatpush.bf16.msra.mxu3 %v365_v13  ;;  %v364_v16 = vld [vmem:[%s512_s3 + $0x70] sm:$0xff]  ;;  %v23_v17 = vpack.c.bf16 %v22_v11, %v22_v11 }
   0x8   :  { %65 = vmatpush.bf16.msra.mxu0 %v267_v10 }
   0x9   :  { %10 = vsyncpa [#allocation3], 0  ;;  %78 = vmatpush.bf16.msra.mxu1 %v271_v14  ;;  %221 = vmatpush.bf16.msra.mxu2 %v356_v15  ;;  %v355_v18 = vld [vmem:[%s512_s3 + $0x28] sm:$0xff]  ;;  %v354_v20 = vld [vmem:[%s512_s3 + $0x20] sm:$0xff]  ;;  %s255_s20 = sshll.u32 %s514_s5, 4  ;;  %vm246_vm1 = vcmask 130048   ;;  %s256_s20 = int_to_ptr.hbm [resolvable:$true] %s255_s20 }
   0xa   :  { %234 = vmatpush.bf16.msra.mxu3 %v364_v16  ;;  %v363_v19 = vld [vmem:[%s512_s3 + $0x68] sm:$0xff]  ;;  %v362_v21 = vld [vmem:[%s512_s3 + $0x60] sm:$0xff]  ;;  %v353_v22 = vld [vmem:[%s512_s3 + $0x18] sm:$0xff] }
   0xb   :  { %280 = vmatmul.msk.bf16.vlgmr.msra.gmra.mxu0 %vm54_vm0, %v23_v17  ;;  %v361_v23 = vld [vmem:[%s512_s3 + $0x58] sm:$0xff]  ;;  %v352_v24 = vld [vmem:[%s512_s3 + $0x10] sm:$0xff]  ;;  %v351_v26 = vld [vmem:[%s512_s3 + $0x8] sm:$0xff] }
   0xc   :  { %281 = vmatmul.msk.bf16.vlgmr.msra.gmra.mxu1 %vm54_vm0, %v23_v17  ;;  %v360_v25 = vld [vmem:[%s512_s3 + $0x50] sm:$0xff]  ;;  %v359_v27 = vld [vmem:[%s512_s3 + $0x48] sm:$0xff]  ;;  %v350_v28 = vld [vmem:[%s512_s3] sm:$0xff] }
   0xd   :  { %222 = vmatpush.bf16.msra.mxu2 %v355_v18  ;;  %v358_v29 = vld [vmem:[%s512_s3 + $0x40] sm:$0xff] }
   0xe   :  { %235 = vmatpush.bf16.msra.mxu3 %v363_v19  ;;  %v28_v30 = vld [vmem:[%s511_s2] sm:$0x3]  ;;  %s394_s2 = smov [#allocation2]  }
   0xf   :  { %v30_v31 = vperm.slane %v28_v30, 0  ;;  %v31_v32 = vperm.slane %v28_v30, 1  ;;  %v367_v43 = vld [vmem:[%s513_s4] ss:$0 sm:$0xff]  ;;  %s253_s0 = sshll.u32 %s394_s2, 4  ;;  %s254_s0 = int_to_ptr.vmem [resolvable:$true] %s253_s0 }
  0x11   :  { %223 = vmatpush.bf16.msra.mxu2 %v354_v20 }
  0x12   :  { %236 = vmatpush.bf16.msra.mxu3 %v362_v21 }
  0x15   :  { %224 = vmatpush.bf16.msra.mxu2 %v353_v22 }
  0x16   :  { %237 = vmatpush.bf16.msra.mxu3 %v361_v23 }
  0x19   :  { %225 = vmatpush.bf16.msra.mxu2 %v352_v24 }
  0x1a   :  { %238 = vmatpush.bf16.msra.mxu3 %v360_v25 }
  0x1d   :  { %226 = vmatpush.bf16.msra.mxu2 %v351_v26 }
  0x1e   :  { %239 = vmatpush.bf16.msra.mxu3 %v359_v27 }
  0x21   :  { %227 = vmatpush.bf16.msra.mxu2 %v350_v28 }
  0x22   :  { %240 = vmatpush.bf16.msra.mxu3 %v358_v29 }
  0x88   :  { %v67_v33 = vpop.f32.mrf.mxu0 }
  0x89   :  { %v68_v34 = vadd.f32 %v67_v33, %v30_v31  ;;  %v80_v35 = vpop.f32.mrf.mxu1 }
  0x8a   :  { %v81_v36 = vadd.f32 %v80_v35, %v31_v32 }
  0x8b   :  { %v84_v37 = vmax.f32 %v68_v34, 0.0 }
  0x8c   :  { %v85_v38 = vmax.f32 %v81_v36, 0.0 }
  0x8d   :  { %v86_v39 = vpack.c.bf16 %v84_v37, %v84_v37 }
  0x8e   :  { %v87_v40 = vpack.c.bf16 %v85_v38, %v85_v38 }
  0x8f   :  { %228 = vmatmul.bf16.vlgmr.msra.gmra.mxu2 %v86_v39 }
  0x90   :  { %241 = vmatmul.bf16.vlgmr.msra.gmra.mxu3 %v87_v40  ;;  %v69_v41 = vpop.f32.mrf.mxu0 }
  0x91   :  { %v82_v42 = vpop.f32.mrf.mxu1 }
 0x112   :  { %v229_v44 = vpop.f32.mrf.mxu2 }
 0x113   :  { %v230_v45 = vadd.f32 %v367_v43, %v229_v44  ;;  %v242_v46 = vpop.f32.mrf.mxu3 }
 0x115   :  { %v243_v47 = vadd.f32 %v242_v46, %v230_v45 }
 0x117   :  { %247 = vst.msk [vmem:[#allocation2] sm:$0xff] %vm246_vm1, %v243_v47 }
 0x118   :  { %258 = dma.vmem_to_hbm [thread:$0]  %s254_s0, 128, %s256_s20, [#allocation3]  }
 0x11a   :  { %v231_v48 = vpop.f32.mrf.mxu2 }
 0x11b   :  { %v244_v49 = vpop.f32.mrf.mxu3 }
 0x11c   :  { %392 = dma.done.wait [#allocation3], 128  }
 0x11d   :  { %393 = vsyncadd [#allocation3], 4294967168 }
 0x11e   :  { %263 = vsyncpa [#allocation3], 1 }

</bundles_post_ra>
